<compile_context>
chip_gen: v6e
topology: v6e:2x2x1
jax: 0.10.0
libtpu: 0.0.40
codegen_flags: <defaults>
</compile_context>

<pallas_src>
import functools

import jax
import jax.numpy as jnp
from jax import lax
from jax.experimental import pallas as pl
from jax.experimental.pallas import tpu as pltpu

ALPHA = 0.25
GAMMA = 2.0

_LANES = 128
_SUBLANES = 8
_STRIP_ROWS = 256  # rows per in-kernel strip: 256*128*4B = 128 KiB f32 temps


def _sublane_grain(dtype) -> int:
    # Minimum second-to-last block dim for this dtype: f32 -> 8, bf16 -> 16,
    # int8/bool -> 32.
    return max(_SUBLANES, 32 // max(1, jnp.dtype(dtype).itemsize))


def _focal_terms(x, t, gamma, binary_targets):
    """Per-element (1 - pt)**gamma * bce in f32 (alpha applied by the caller)."""
    x = x.astype(jnp.float32)
    t = t.astype(jnp.float32)
    # Numerically stable BCE-with-logits (== torch binary_cross_entropy_with_logits,
    # reduce=False):  bce = max(x, 0) - x*t + log1p(exp(-|x|))
    e = jnp.exp(-jnp.abs(x))
    bce = jnp.maximum(x, 0.0) - x * t + jnp.log1p(e)

    if binary_targets:
        # For t in {0, 1}:  exp(x*t - max(x,0)) equals exp(-|x|) when sign(x)
        # and t disagree, else 1.  Reusing e drops the third transcendental
        # (exp(-bce)) -> big win on EUP-bound v7x, free elsewhere.
        # NOTE: only valid for hard 0/1 targets; kernel-only path (pl.reciprocal).
        mismatch = (t > 0.5) != (x >= 0.0)
        pt = jnp.where(mismatch, e, 1.0) * pl.reciprocal(1.0 + e, approx=True)
    else:
        pt = jnp.exp(-bce)  # exact for arbitrary (soft) targets

    omp = 1.0 - pt
    g = float(gamma)
    if g == 2.0:
        mod = omp * omp  # avoid float-pow (exp/log on the single EUP slot)
    elif g == int(g) and g >= 0.0:
        mod = lax.integer_pow(omp, int(g))
    else:
        mod = jnp.maximum(omp, 0.0) ** g  # clamp guards pow-of-negative NaNs
    return mod * bce  # alpha hoisted to the wrapper


def _focal_loss_kernel(x_ref, t_ref, out_ref, *, gamma, strip_rows, n_strips,
                       valid_rows, binary_targets):
    block_rows = n_strips * strip_rows

    if valid_rows is not None:
        # Rows left that hold real data in this block; >= block_rows everywhere
        # except the ragged last block, whose trailing rows were filled by a
        # partial edge DMA (unspecified values) and must be zeroed BEFORE the
        # reduction.
        rows_left = valid_rows - pl.program_id(0) * block_rows

    def strip_partial(base, x, t):
        f = _focal_terms(x, t, gamma, binary_targets)
        if valid_rows is not None:
            row = base + lax.broadcasted_iota(jnp.int32, f.shape, 0)
            f = jnp.where(row < rows_left, f, 0.0)
        # (strip_rows, 128) -> (8, 128) partial sum with pure VPU adds
        # (layout-free sublane-split reshape; no XLU reduce, no MXU).
        return jnp.sum(
            f.reshape(strip_rows // _SUBLANES, _SUBLANES, _LANES), axis=0)

    if n_strips == 1:
        out_ref[...] = strip_partial(0, x_ref[...], t_ref[...])
    else:
        def body(s, acc):
            base = pl.multiple_of(s * strip_rows, strip_rows)
            x = x_ref[pl.ds(base, strip_rows), :]
            t = t_ref[pl.ds(base, strip_rows), :]
            return acc + strip_partial(base, x, t)

        out_ref[...] = lax.fori_loop(
            0, n_strips, body, jnp.zeros((_SUBLANES, _LANES), jnp.float32))


def focal_loss(inputs, targets, *, alpha=ALPHA, gamma=GAMMA,
               block_rows=4096, assume_binary_targets=False):
    """Mean focal loss over all elements (FocalLoss(logits=True, reduce=True)).

    Accepts f32/bf16 logits and f32/bf16/int8/bool targets (math is f32
    internally).  Set assume_binary_targets=True when targets are hard {0,1}
    labels to drop one transcendental per element (helps EUP-bound v7x).
    """
    # TODO(synk): logits=False and reduce=False branches of FocalLoss are not implemented.
    total = int(inputs.size)
    assert total > 0, "empty input"
    assert inputs.shape == targets.shape

    x_flat = inputs.reshape(-1)
    t_flat = targets.reshape(-1)

    grain = max(_sublane_grain(x_flat.dtype), _sublane_grain(t_flat.dtype))

    # Tiny inputs: not worth a kernel launch; plain XLA handles them exactly.
    if pl.cdiv(total, _LANES) < grain:
        f = _focal_terms(x_flat, t_flat, gamma, binary_targets=False)
        return jnp.float32(float(alpha)) * jnp.mean(f)

    rem = total % _LANES
    if rem:
        # Rare for NN tensors.  Pad <128 benign elements (x=100, t=1 contribute
        # exactly 0) so the flat -> (m, 128) reshape is legal.  This is the only
        # shape path that copies the inputs; everything else is copy-free.
        pad = _LANES - rem
        x_flat = jnp.concatenate(
            [x_flat, jnp.full((pad,), 100.0, dtype=x_flat.dtype)])
        t_flat = jnp.concatenate(
            [t_flat, jnp.ones((pad,), dtype=t_flat.dtype)])

    m = x_flat.size // _LANES          # 128-lane rows (free reshape, no copy)
    x2d = x_flat.reshape(m, _LANES)
    t2d = t_flat.reshape(m, _LANES)

    # ---- Tile-size selection ------------------------------------------------
    req = max(1, int(block_rows))
    req = min(req, m)
    if m // 4 >= _STRIP_ROWS:          # keep >= 4 blocks so v7x's 2 TCs stay fed
        req = min(req, m // 4)
    if req >= _STRIP_ROWS and m >= _STRIP_ROWS:
        strip = _STRIP_ROWS
        blk = (req // _STRIP_ROWS) * _STRIP_ROWS
    else:
        blk = max(grain, (req // grain) * grain)
        strip = blk
    n_strips = blk // strip
    num_blocks = pl.cdiv(m, blk)
    # Rows past `m` in the (partial) last block are unspecified -> mask them
    # in-kernel.  Statically skipped when the shape tiles exactly.
    valid_rows = m if (m % blk) else None

    kernel = functools.partial(
        _focal_loss_kernel, gamma=float(gamma), strip_rows=strip,
        n_strips=n_strips, valid_rows=valid_rows,
        binary_targets=bool(assume_binary_targets))

    # Scoped-VMEM budget: double-buffered input tiles + strip temporaries +
    # slack; capped at 32 MiB so it stays portable to v7x (64 MiB physical).
    in_bytes = x2d.dtype.itemsize + t2d.dtype.itemsize
    vmem_need = (2 * blk * _LANES * in_bytes
                 + 12 * strip * _LANES * 4 + (2 << 20))
    vmem_limit = int(min(max(vmem_need, 16 << 20), 32 << 20))

    partials = pl.pallas_call(
        kernel,
        out_shape=jax.ShapeDtypeStruct((num_blocks * _SUBLANES, _LANES),
                                       jnp.float32),
        grid_spec=pltpu.PrefetchScalarGridSpec(
            num_scalar_prefetch=0,
            grid=(num_blocks,),
            in_specs=[
                pl.BlockSpec((blk, _LANES), lambda i: (i, 0)),
                pl.BlockSpec((blk, _LANES), lambda i: (i, 0)),
            ],
            out_specs=pl.BlockSpec((_SUBLANES, _LANES), lambda i: (i, 0)),
        ),
        compiler_params=pltpu.CompilerParams(
            dimension_semantics=("parallel",),
            vmem_limit_bytes=vmem_limit,
        ),
    )(x2d, t2d)

    # Tiny final cross-lane reduction + mean in the wrapper; alpha hoisted here
    # (loss is linear in alpha).  Division uses the TRUE element count.
    return jnp.sum(partials) * jnp.float32(float(alpha) / float(total))


def _focal_loss_ref(inputs, targets, alpha=ALPHA, gamma=GAMMA):
    x = inputs.astype(jnp.float32)
    t = targets.astype(jnp.float32)
    bce = jnp.maximum(x, 0.0) - x * t + jnp.log1p(jnp.exp(-jnp.abs(x)))
    pt = jnp.exp(-bce)
    return jnp.mean(alpha * (1.0 - pt) ** gamma * bce)


if __name__ == "__main__":
    key = jax.random.PRNGKey(0)
    k1, k2, k3, k4, k5, k6 = jax.random.split(key, 6)

    # NCHW: batch=2, channels=4, spatial=16x16 (2048 elements, lane-aligned).
    x = jax.random.normal(k1, (2, 4, 16, 16), dtype=jnp.float32)
    t = jax.random.bernoulli(k2, 0.5, (2, 4, 16, 16)).astype(jnp.float32)

    loss = focal_loss(x, t)
    jax.block_until_ready(loss)
    ref = _focal_loss_ref(x, t)
    assert jnp.allclose(loss, ref, rtol=1e-5, atol=1e-5), (loss, ref)

    # Binary-target fast path (drops exp(-bce); approx EUP reciprocal -> loose tol).
    loss_bin = focal_loss(x, t, assume_binary_targets=True)
    jax.block_until_ready(loss_bin)
    assert jnp.allclose(loss_bin, ref, rtol=1e-2, atol=1e-4), (loss_bin, ref)

    # Ragged shape: exercises the in-kernel partial-last-block row mask and the
    # (<128-element) lane-padding path.
    xr = jax.random.normal(k3, (3, 5, 11, 7), dtype=jnp.float32)
    tr = jax.random.bernoulli(k4, 0.5, (3, 5, 11, 7)).astype(jnp.float32)
    loss_r = focal_loss(xr, tr)
    jax.block_until_ready(loss_r)
    ref_r = _focal_loss_ref(xr, tr)
    assert jnp.allclose(loss_r, ref_r, rtol=1e-5, atol=1e-5), (loss_r, ref_r)

    # Larger bf16 input: exercises the strip-mined fori_loop path, multi-block
    # 'parallel' grid and narrow input dtypes (kernel upcasts internally).
    xb = jax.random.normal(k5, (8, 64, 64, 16), dtype=jnp.bfloat16)
    tb = jax.random.bernoulli(k6, 0.5, (8, 64, 64, 16)).astype(jnp.bfloat16)
    loss_b = focal_loss(xb, tb)
    jax.block_until_ready(loss_b)
    ref_b = _focal_loss_ref(xb, tb)
    assert jnp.allclose(loss_b, ref_b, rtol=1e-4, atol=1e-5), (loss_b, ref_b)

    print("KERNEL_OK")
</pallas_src>

<mosaic_0001>
module attributes {stable_mosaic.version = 11 : i64} {
  func.func @_focal_loss_kernel(%arg0: i32, %arg1: memref<16x128xf32, #tpu.memory_space<vmem>>, %arg2: memref<16x128xf32, #tpu.memory_space<vmem>>, %arg3: memref<8x128xf32, #tpu.memory_space<vmem>>) attributes {dimension_semantics = [#tpu.dimension_semantics<parallel>], iteration_bounds = array<i64: 1>, scalar_prefetch = 0 : i64, scratch_operands = 0 : i64, tpu.core_type = #tpu.core_type<tc>, window_params = [{transform_indices = @transform_0, window_bounds = array<i64: 16, 128>}, {transform_indices = @transform_1, window_bounds = array<i64: 16, 128>}, {transform_indices = @transform_2, window_bounds = array<i64: 8, 128>}]} {
    %c0 = arith.constant 0 : index
    %c0_0 = arith.constant 0 : index
    %0 = vector.load %arg1[%c0, %c0_0] : memref<16x128xf32, #tpu.memory_space<vmem>>, vector<16x128xf32>
    %c0_1 = arith.constant 0 : index
    %c0_2 = arith.constant 0 : index
    %1 = vector.load %arg2[%c0_1, %c0_2] : memref<16x128xf32, #tpu.memory_space<vmem>>, vector<16x128xf32>
    %2 = math.absf %0 : vector<16x128xf32>
    %cst = arith.constant 0.000000e+00 : f32
    %3 = vector.broadcast %cst : f32 to vector<16x128xf32>
    %4 = arith.subf %3, %2 : vector<16x128xf32>
    %5 = math.exp %4 : vector<16x128xf32>
    %cst_3 = arith.constant 0.000000e+00 : f32
    %6 = vector.broadcast %cst_3 : f32 to vector<16x128xf32>
    %7 = arith.maximumf %0, %6 : vector<16x128xf32>
    %8 = arith.mulf %0, %1 : vector<16x128xf32>
    %9 = arith.subf %7, %8 : vector<16x128xf32>
    %10 = math.log1p %5 : vector<16x128xf32>
    %11 = arith.addf %9, %10 : vector<16x128xf32>
    %cst_4 = arith.constant 0.000000e+00 : f32
    %12 = vector.broadcast %cst_4 : f32 to vector<16x128xf32>
    %13 = arith.subf %12, %11 : vector<16x128xf32>
    %14 = math.exp %13 : vector<16x128xf32>
    %cst_5 = arith.constant 1.000000e+00 : f32
    %15 = vector.broadcast %cst_5 : f32 to vector<16x128xf32>
    %16 = arith.subf %15, %14 : vector<16x128xf32>
    %17 = arith.mulf %16, %16 : vector<16x128xf32>
    %18 = arith.mulf %17, %11 : vector<16x128xf32>
    %19 = vector.shape_cast %18 : vector<16x128xf32> to vector<2x8x128xf32>
    %cst_6 = arith.constant dense<0.000000e+00> : vector<8x128xf32>
    %20 = vector.multi_reduction <add>, %19, %cst_6 [0] : vector<2x8x128xf32> to vector<8x128xf32>
    %c0_7 = arith.constant 0 : index
    %c0_8 = arith.constant 0 : index
    %21 = vector.load %arg3[%c0_7, %c0_8] : memref<8x128xf32, #tpu.memory_space<vmem>>, vector<8x128xf32>
    tpu.vector_store %arg3[%c0_7, %c0_8], %20 {strides = array<i32>} : memref<8x128xf32, #tpu.memory_space<vmem>>, vector<8x128xf32>,
    return
  }
  func.func @transform_0(%arg0: i32) -> (i32, i32) {
    %c0_i32 = arith.constant 0 : i32
    %c0_i32_0 = arith.constant 0 : i32
    return %arg0, %c0_i32 : i32, i32
  }
  func.func @transform_1(%arg0: i32) -> (i32, i32) {
    %c0_i32 = arith.constant 0 : i32
    %c0_i32_0 = arith.constant 0 : i32
    return %arg0, %c0_i32 : i32, i32
  }
  func.func @transform_2(%arg0: i32) -> (i32, i32) {
    %c0_i32 = arith.constant 0 : i32
    %c0_i32_0 = arith.constant 0 : i32
    return %arg0, %c0_i32 : i32, i32
  }
}

</mosaic_0001>

<bundles_post_ra>
// kernel: tpu_custom_call.1
= control target key start
LH: loop header
LB: loop body
LE: loop exit
PB: predicated region body
PF: predicated region fallthrough
CT: control target
= control target key end

     0   :  { %7 = vsyncpa [#allocation3], 0  ;;  %s220_s0 = inlined_call_operand.hbm [shape: f32[16,128], index: 0, kind: input, shape index: {}]   ;;  %s221_s1 = inlined_call_operand.hbm [shape: f32[16,128], index: 1, kind: input, shape index: {}]   ;;  %s222_s2 = inlined_call_operand.hbm [shape: f32[8,128], index: 2, kind: output, shape index: {}]  }
   0x1   :  { %8 = vsyncpa [#allocation6], 0 }
   0x2   :  { %9 = vsyncpa [#allocation4], 0  ;;  %s191_s9 = smov [#allocation2]  }
   0x3   :  { %s15_s10 = sshll.u32 %s191_s9, 4  ;;  %s16_s10 = int_to_ptr.vmem [resolvable:$true] %s15_s10 }
   0x4   :  { %s133_s11 = scalar_lea.vmem %s16_s10, 256  ;;  %p138_p1 = scmp.lt.s32.totalorder %s16_s10, %s16_s10 }
   0x5   :  { %p134_p0 = scmp.ne.s32.totalorder %s16_s10, %s133_s11  ;;  %p139_p2 = scmp.lt.s32.totalorder %s133_s11, %s133_s11 }
   0x7   :  { %p140_p3 = por %p139_p2, %p138_p1 }
   0x9   :  { %p141_p4 = pnand %p140_p3, %p134_p0 }
   0xb   :  { %144 = shalt.err (!%p141_p4)
}
   0xc   :  { %s192_s12 = smov 128   ;;  %s193_s13 = smov 8  }
   0xd   :  { %21 = dma.hbm_to_vmem [thread:$0]  %s220_s0, 256, %s16_s10, [#allocation3], %s192_s12, %s192_s12, %s193_s13  }
   0xe   :  { %s194_s16 = smov [#allocation5]  }
   0xf   :  { %s27_s17 = sshll.u32 %s194_s16, 4  ;;  %s28_s17 = int_to_ptr.vmem [resolvable:$true] %s27_s17 }
  0x10   :  { %s153_s18 = scalar_lea.vmem %s28_s17, 256  ;;  %p158_p6 = scmp.lt.s32.totalorder %s28_s17, %s28_s17 }
  0x11   :  { %p154_p5 = scmp.ne.s32.totalorder %s28_s17, %s153_s18  ;;  %p159_p7 = scmp.lt.s32.totalorder %s153_s18, %s153_s18 }
  0x13   :  { %p160_p8 = por %p159_p7, %p158_p6 }
  0x15   :  { %p161_p9 = pnand %p160_p8, %p154_p5 }
  0x17   :  { %164 = shalt.err (!%p161_p9)
}
  0x18   :  { %33 = dma.hbm_to_vmem [thread:$0]  %s221_s1, 256, %s28_s17, [#allocation6], %s192_s12, %s192_s12, %s193_s13  }
  0x19   :  { %185 = dma.done.wait [#allocation3], 256  }
  0x1a   :  { %186 = vsyncadd [#allocation3], 4294967040 }
  0x1b   :  { %187 = dma.done.wait [#allocation6], 256  }
  0x1c   :  { %188 = vsyncadd [#allocation6], 4294967040  ;;  %v40_v0 = vld [vmem:[#allocation2] sm:$0xff]  ;;  %v41_v1 = vld [vmem:[#allocation2 + $0x8] sm:$0xff]  ;;  %s195_s0 = smov [#allocation7]  }
  0x1d   :  { %v44_v2 = vand.u32 2147483647, %v40_v0  ;;  %v45_v3 = vand.u32 2147483647, %v41_v1  ;;  %v42_v14 = vld [vmem:[#allocation5] sm:$0xff]  ;;  %v43_v15 = vld [vmem:[#allocation5 + $0x8] sm:$0xff] }
  0x1e   :  { %v52_v17 = vmax.f32 %v40_v0, 0.0  ;;  %v54_v18 = vmul.f32 %v42_v14, %v40_v0  ;;  %v53_v21 = vmax.f32 %v41_v1, 0.0  ;;  %v55_v22 = vmul.f32 %v43_v15, %v41_v1  ;;  %s98_s1 = sshll.u32 %s195_s0, 4  ;;  %s99_s1 = int_to_ptr.vmem [resolvable:$true] %s98_s1 }
  0x1f   :  { %v46_v4 = vsub.f32 0.0, %v44_v2  ;;  %v47_v5 = vsub.f32 0.0, %v45_v3  ;;  %s165_s21 = scalar_lea.vmem %s99_s1, 128  ;;  %p170_p11 = scmp.lt.s32.totalorder %s99_s1, %s99_s1 }
  0x20   :  { %v56_v26 = vsub.f32 %v52_v17, %v54_v18  ;;  %v57_v29 = vsub.f32 %v53_v21, %v55_v22  ;;  %p166_p10 = scmp.ne.s32.totalorder %s99_s1, %s165_s21  ;;  %p171_p12 = scmp.lt.s32.totalorder %s165_s21, %s165_s21 }
  0x21   :  { %v48_v6 = vmul.f32 1.442695, %v46_v4  ;;  %v50_v7 = vmul.f32 1.442695, %v47_v5 }
  0x22   :  { %p172_p13 = por %p171_p12, %p170_p11 }
  0x23   :  { %113 = vpow2.f32 %v48_v6 }
  0x24   :  { %115 = vpow2.f32 %v50_v7  ;;  %p173_p0 = pnand %p172_p13, %p166_p10 }
  0x30   :  { %v114_v8 = vpop.eup %113 }
  0x31   :  { %v116_v9 = vpop.eup %115  ;;  %v58_v10 = vadd.f32 1.0, %v114_v8  ;;  %v61_v12 = vmul.f32 -0.5, %v114_v8  ;;  %v64_v19 = vand.u32 2147483647, %v114_v8 }
  0x32   :  { %v67_v11 = vadd.f32 1.0, %v116_v9  ;;  %v70_v13 = vmul.f32 -0.5, %v116_v9  ;;  %v73_v23 = vand.u32 2147483647, %v116_v9 }
  0x33   :  { %117 = vlog2.f32 %v58_v10  ;;  %v62_v16 = vadd.f32 1.0, %v61_v12  ;;  %vm65_vm0 = vcmp.lt.f32.partialorder %v64_v19, 0.0004427343 }
  0x34   :  { %119 = vlog2.f32 %v67_v11  ;;  %v71_v20 = vadd.f32 1.0, %v70_v13  ;;  %vm74_vm1 = vcmp.lt.f32.partialorder %v73_v23, 0.0004427343 }
  0x35   :  { %v63_v24 = vmul.f32 %v114_v8, %v62_v16 }
  0x36   :  { %v72_v27 = vmul.f32 %v116_v9, %v71_v20 }
  0x40   :  { %v118_v25 = vpop.eup %117 }
  0x41   :  { %v120_v28 = vpop.eup %119  ;;  %v60_v30 = vmul.f32 0.6931472, %v118_v25 }
  0x42   :  { %v69_v31 = vmul.f32 0.6931472, %v120_v28 }
  0x43   :  { %v66_v32 = vsel %vm65_vm0, %v63_v24, %v60_v30 }
  0x44   :  { %v75_v33 = vsel %vm74_vm1, %v72_v27, %v69_v31  ;;  %v76_v34 = vadd.f32 %v66_v32, %v56_v26 }
  0x45   :  { %v77_v35 = vadd.f32 %v75_v33, %v57_v29 }
  0x46   :  { %v78_v36 = vsub.f32 0.0, %v76_v34 }
  0x47   :  { %v79_v37 = vsub.f32 0.0, %v77_v35 }
  0x48   :  { %v80_v38 = vmul.f32 1.442695, %v78_v36 }
  0x49   :  { %v82_v39 = vmul.f32 1.442695, %v79_v37 }
  0x4a   :  { %121 = vpow2.f32 %v80_v38 }
  0x4b   :  { %123 = vpow2.f32 %v82_v39 }
  0x57   :  { %v122_v40 = vpop.eup %121 }
  0x58   :  { %v124_v41 = vpop.eup %123  ;;  %v84_v42 = vsub.f32 1.0, %v122_v40 }
  0x59   :  { %v85_v43 = vsub.f32 1.0, %v124_v41 }
  0x5a   :  { %v86_v44 = vmul.f32 %v84_v42, %v84_v42 }
  0x5b   :  { %v87_v45 = vmul.f32 %v85_v43, %v85_v43 }
  0x5c   :  { %v88_v46 = vmul.f32 %v86_v44, %v76_v34 }
  0x5d   :  { %v89_v47 = vmul.f32 %v87_v45, %v77_v35 }
  0x5f   :  { %v90_v48 = vadd.f32 %v89_v47, %v88_v46 }
  0x61   :  { %91 = vst [vmem:[#allocation7] sm:$0xff] %v90_v48 }
  0x62   :  { %176 = shalt.err (!%p173_p0)
}
  0x63   :  { %101 = dma.vmem_to_hbm [thread:$0]  %s99_s1, 128, %s222_s2, [#allocation4]  }
  0x64   :  { %189 = dma.done.wait [#allocation4], 128  }
  0x65   :  { %190 = vsyncadd [#allocation4], 4294967168 }
  0x66   :  { %105 = vsyncpa [#allocation3], 1 }
  0x67   :  { %106 = vsyncpa [#allocation6], 1 }
  0x68   :  { %107 = vsyncpa [#allocation4], 1 }

</bundles_post_ra>
